<compile_context>
chip_gen: v6e
topology: v6e:2x2x1
jax: 0.10.0
libtpu: 0.0.40
codegen_flags: <defaults>
</compile_context>

<pallas_src>
import jax
import jax.numpy as jnp
from jax.experimental import pallas as pl
from jax.experimental.pallas import tpu as pltpu

# ---- small synthetic config (consistent with the module's __init__) --------
N_ENTITIES = 256        # len(d.entities)
N_RELATIONS = 8         # len(d.relations)
ENTITY_DIM = 16         # entity_dim arg; embedding width = 2 * entity_dim
D = ENTITY_DIM          # real / imaginary half-width
TWO_D = 2 * ENTITY_DIM
BATCH = 8
BN_EPS = 1e-5           # BatchNorm1d default eps, gamma=1 / beta=0 at init


# --------------------------- Pallas kernel ----------------------------------
def _complex_kge_kernel(h_ref, r_ref, et_ref, tgt_ref, score_ref, loss_ref):
    h = h_ref[...]                       # [B, 2D]
    r = r_ref[...]                       # [B, 2D]

    def _bn(x):
        # BatchNorm1d(2) training-mode stats for one channel: normalize over
        # (batch, D) with biased variance; affine params at init (1, 0).
        m = jnp.mean(x, keepdims=True)                       # [1, 1]
        v = jnp.mean(jnp.square(x - m), keepdims=True)       # [1, 1]
        return (x - m) * jax.lax.rsqrt(v + BN_EPS)

    re_head = _bn(h[:, :D])
    im_head = _bn(h[:, D:])
    re_rel = r[:, :D]
    im_rel = r[:, D:]

    # complex product, then score_bn (training stats, per channel)
    re_s = _bn(re_head * re_rel - im_head * im_rel)
    im_s = _bn(re_head * im_rel + im_head * re_rel)
    score_cat = jnp.concatenate([re_s, im_s], axis=-1)       # [B, 2D]

    # single fused lane-dense matmul: [B, 2D] x [2D, N] -> [B, N]
    logits = jnp.dot(score_cat, et_ref[...],
                     preferred_element_type=jnp.float32)
    p = jax.nn.sigmoid(logits)
    score_ref[...] = p                                       # lane-dense store

    # BCELoss(mean) computed from logits (numerically stable), keeping the
    # PyTorch -100 clamp on each log term:
    #   log(p)   = logits - softplus(logits)
    #   log(1-p) = -softplus(logits)
    sp = jnp.maximum(logits, 0.0) + jnp.log(1.0 + jnp.exp(-jnp.abs(logits)))
    log_p = jnp.maximum(logits - sp, -100.0)
    log_1mp = jnp.maximum(-sp, -100.0)

    t = tgt_ref[...]
    bce = -(t * log_p + (1.0 - t) * log_1mp)                 # [B, N] on VPU
    loss_ref[0] = jnp.sum(bce) * (1.0 / (BATCH * N_ENTITIES))


# --------------------------- wrapper -----------------------------------------
@jax.jit
def complex_kge_forward(E, R, h_idx, r_idx, targets):
    h = E[h_idx]                    # [B, 2D] embedding lookup (XLA gather)
    r = R[r_idx]                    # [B, 2D]
    e_t = E.T                       # [2D, N] lane-dense tail for the kernel

    scores, loss = pl.pallas_call(
        _complex_kge_kernel,
        out_shape=(
            jax.ShapeDtypeStruct((BATCH, N_ENTITIES), jnp.float32),  # scores
            jax.ShapeDtypeStruct((1,), jnp.float32),                 # loss
        ),
        in_specs=[
            pl.BlockSpec(memory_space=pltpu.MemorySpace.VMEM),   # h
            pl.BlockSpec(memory_space=pltpu.MemorySpace.VMEM),   # r
            pl.BlockSpec(memory_space=pltpu.MemorySpace.VMEM),   # E^T
            pl.BlockSpec(memory_space=pltpu.MemorySpace.VMEM),   # targets
        ],
        out_specs=(
            pl.BlockSpec(memory_space=pltpu.MemorySpace.VMEM),   # scores
            pl.BlockSpec(memory_space=pltpu.MemorySpace.SMEM),   # loss scalar
        ),
    )(h, r, e_t, targets)
    # NOTE: at realistic KGE sizes (N >> 1e4) the entity axis would be tiled
    # with a grid and sharded across TensorCores; at N=256 one step is optimal.
    return loss[0], scores


# --------------------------- pure-JAX reference -------------------------------
def _bn_train(x):
    # BatchNorm1d(2) on [B, 2, D]: per-channel stats over (batch, D).
    mean = jnp.mean(x, axis=(0, 2), keepdims=True)
    var = jnp.mean((x - mean) ** 2, axis=(0, 2), keepdims=True)
    return (x - mean) * jax.lax.rsqrt(var + BN_EPS)


def reference_forward(E, R, h_idx, r_idx, targets):
    h = E[h_idx]
    r = R[r_idx]

    head = jnp.stack([h[:, :D], h[:, D:]], axis=1)        # [B, 2, D]
    head = _bn_train(head)
    re_head, im_head = head[:, 0, :], head[:, 1, :]

    re_rel, im_rel = r[:, :D], r[:, D:]
    re_score = re_head * re_rel - im_head * im_rel
    im_score = re_head * im_rel + im_head * re_rel

    score = _bn_train(jnp.stack([re_score, im_score], axis=1))
    re_score, im_score = score[:, 0, :], score[:, 1, :]

    re_tail, im_tail = E[:, :D], E[:, D:]
    logits = re_score @ re_tail.T + im_score @ im_tail.T
    p = jax.nn.sigmoid(logits)

    log_p = jnp.maximum(jnp.log(p), -100.0)
    log_1mp = jnp.maximum(jnp.log(1.0 - p), -100.0)
    loss = jnp.mean(-(targets * log_p + (1.0 - targets) * log_1mp))
    return loss, p


# ------------------------------- main -----------------------------------------
if __name__ == "__main__":
    key = jax.random.PRNGKey(0)
    k_e, k_r, k_h, k_rel, k_t = jax.random.split(key, 5)

    # xavier_normal_ on the embedding weights (padding row is overwritten by
    # xavier init in the PyTorch module too, so no zeroing).
    std_e = (2.0 / (N_ENTITIES + TWO_D)) ** 0.5
    std_r = (2.0 / (N_RELATIONS + TWO_D)) ** 0.5
    E = std_e * jax.random.normal(k_e, (N_ENTITIES, TWO_D), dtype=jnp.float32)
    R = std_r * jax.random.normal(k_r, (N_RELATIONS, TWO_D), dtype=jnp.float32)

    h_idx = jax.random.randint(k_h, (BATCH,), 0, N_ENTITIES, dtype=jnp.int32)
    r_idx = jax.random.randint(k_rel, (BATCH,), 0, N_RELATIONS, dtype=jnp.int32)
    targets = jax.random.bernoulli(
        k_t, 0.1, (BATCH, N_ENTITIES)).astype(jnp.float32)

    loss, scores = complex_kge_forward(E, R, h_idx, r_idx, targets)
    jax.block_until_ready((loss, scores))

    ref_loss, ref_scores = reference_forward(E, R, h_idx, r_idx, targets)
    assert jnp.isfinite(loss), "loss is not finite"
    assert jnp.allclose(scores, ref_scores, rtol=1e-4, atol=1e-4), "scores mismatch"
    assert jnp.allclose(loss, ref_loss, rtol=1e-4, atol=1e-4), "loss mismatch"

    print("KERNEL_OK")
</pallas_src>

<mosaic_0001>
module attributes {stable_mosaic.version = 11 : i64} {
  func.func @_complex_kge_kernel(%arg0: memref<8x32xf32, #tpu.memory_space<vmem>>, %arg1: memref<8x32xf32, #tpu.memory_space<vmem>>, %arg2: memref<32x256xf32, #tpu.memory_space<vmem>>, %arg3: memref<8x256xf32, #tpu.memory_space<vmem>>, %arg4: memref<8x256xf32, #tpu.memory_space<vmem>>, %arg5: memref<1xf32, #tpu.memory_space<smem>>) attributes {dimension_semantics = [], scalar_prefetch = 0 : i64, scratch_operands = 0 : i64, tpu.core_type = #tpu.core_type<tc>} {
    %c0 = arith.constant 0 : index
    %c0_0 = arith.constant 0 : index
    %0 = vector.load %arg0[%c0, %c0_0] : memref<8x32xf32, #tpu.memory_space<vmem>>, vector<8x32xf32>
    %c0_1 = arith.constant 0 : index
    %c0_2 = arith.constant 0 : index
    %1 = vector.load %arg1[%c0_1, %c0_2] : memref<8x32xf32, #tpu.memory_space<vmem>>, vector<8x32xf32>
    %2 = vector.extract_strided_slice %0 {offsets = [0, 0], sizes = [8, 16], strides = [1, 1]} : vector<8x32xf32> to vector<8x16xf32>
    %3 = vector.shape_cast %2 : vector<8x16xf32> to vector<1x8x16xf32>
    %cst = arith.constant dense<0.000000e+00> : vector<1xf32>
    %4 = vector.multi_reduction <add>, %3, %cst [1, 2] : vector<1x8x16xf32> to vector<1xf32>
    %5 = vector.shape_cast %4 : vector<1xf32> to vector<1x1x1xf32>
    %6 = vector.extract %5[0, 0, 0] : f32 from vector<1x1x1xf32>
    %7 = vector.broadcast %6 : f32 to vector<1x1xf32>
    %cst_3 = arith.constant 1.280000e+02 : f32
    %8 = vector.broadcast %cst_3 : f32 to vector<1x1xf32>
    %9 = arith.divf %7, %8 : vector<1x1xf32>
    %10 = vector.broadcast %9 : vector<1x1xf32> to vector<8x16xf32>
    %11 = arith.subf %2, %10 : vector<8x16xf32>
    %12 = arith.mulf %11, %11 : vector<8x16xf32>
    %13 = vector.shape_cast %12 : vector<8x16xf32> to vector<1x8x16xf32>
    %cst_4 = arith.constant dense<0.000000e+00> : vector<1xf32>
    %14 = vector.multi_reduction <add>, %13, %cst_4 [1, 2] : vector<1x8x16xf32> to vector<1xf32>
    %15 = vector.shape_cast %14 : vector<1xf32> to vector<1x1x1xf32>
    %16 = vector.extract %15[0, 0, 0] : f32 from vector<1x1x1xf32>
    %17 = vector.broadcast %16 : f32 to vector<1x1xf32>
    %cst_5 = arith.constant 1.280000e+02 : f32
    %18 = vector.broadcast %cst_5 : f32 to vector<1x1xf32>
    %19 = arith.divf %17, %18 : vector<1x1xf32>
    %20 = vector.broadcast %9 : vector<1x1xf32> to vector<8x16xf32>
    %21 = arith.subf %2, %20 : vector<8x16xf32>
    %cst_6 = arith.constant 9.99999974E-6 : f32
    %22 = vector.broadcast %cst_6 : f32 to vector<1x1xf32>
    %23 = arith.addf %19, %22 : vector<1x1xf32>
    %24 = math.rsqrt %23 : vector<1x1xf32>
    %25 = vector.broadcast %24 : vector<1x1xf32> to vector<8x16xf32>
    %26 = arith.mulf %21, %25 : vector<8x16xf32>
    %27 = vector.extract_strided_slice %0 {offsets = [0, 16], sizes = [8, 16], strides = [1, 1]} : vector<8x32xf32> to vector<8x16xf32>
    %28 = vector.shape_cast %27 : vector<8x16xf32> to vector<1x8x16xf32>
    %cst_7 = arith.constant dense<0.000000e+00> : vector<1xf32>
    %29 = vector.multi_reduction <add>, %28, %cst_7 [1, 2] : vector<1x8x16xf32> to vector<1xf32>
    %30 = vector.shape_cast %29 : vector<1xf32> to vector<1x1x1xf32>
    %31 = vector.extract %30[0, 0, 0] : f32 from vector<1x1x1xf32>
    %32 = vector.broadcast %31 : f32 to vector<1x1xf32>
    %cst_8 = arith.constant 1.280000e+02 : f32
    %33 = vector.broadcast %cst_8 : f32 to vector<1x1xf32>
    %34 = arith.divf %32, %33 : vector<1x1xf32>
    %35 = vector.broadcast %34 : vector<1x1xf32> to vector<8x16xf32>
    %36 = arith.subf %27, %35 : vector<8x16xf32>
    %37 = arith.mulf %36, %36 : vector<8x16xf32>
    %38 = vector.shape_cast %37 : vector<8x16xf32> to vector<1x8x16xf32>
    %cst_9 = arith.constant dense<0.000000e+00> : vector<1xf32>
    %39 = vector.multi_reduction <add>, %38, %cst_9 [1, 2] : vector<1x8x16xf32> to vector<1xf32>
    %40 = vector.shape_cast %39 : vector<1xf32> to vector<1x1x1xf32>
    %41 = vector.extract %40[0, 0, 0] : f32 from vector<1x1x1xf32>
    %42 = vector.broadcast %41 : f32 to vector<1x1xf32>
    %cst_10 = arith.constant 1.280000e+02 : f32
    %43 = vector.broadcast %cst_10 : f32 to vector<1x1xf32>
    %44 = arith.divf %42, %43 : vector<1x1xf32>
    %45 = vector.broadcast %34 : vector<1x1xf32> to vector<8x16xf32>
    %46 = arith.subf %27, %45 : vector<8x16xf32>
    %cst_11 = arith.constant 9.99999974E-6 : f32
    %47 = vector.broadcast %cst_11 : f32 to vector<1x1xf32>
    %48 = arith.addf %44, %47 : vector<1x1xf32>
    %49 = math.rsqrt %48 : vector<1x1xf32>
    %50 = vector.broadcast %49 : vector<1x1xf32> to vector<8x16xf32>
    %51 = arith.mulf %46, %50 : vector<8x16xf32>
    %52 = vector.extract_strided_slice %1 {offsets = [0, 0], sizes = [8, 16], strides = [1, 1]} : vector<8x32xf32> to vector<8x16xf32>
    %53 = vector.extract_strided_slice %1 {offsets = [0, 16], sizes = [8, 16], strides = [1, 1]} : vector<8x32xf32> to vector<8x16xf32>
    %54 = arith.mulf %26, %52 : vector<8x16xf32>
    %55 = arith.mulf %51, %53 : vector<8x16xf32>
    %56 = arith.subf %54, %55 : vector<8x16xf32>
    %57 = vector.shape_cast %56 : vector<8x16xf32> to vector<1x8x16xf32>
    %cst_12 = arith.constant dense<0.000000e+00> : vector<1xf32>
    %58 = vector.multi_reduction <add>, %57, %cst_12 [1, 2] : vector<1x8x16xf32> to vector<1xf32>
    %59 = vector.shape_cast %58 : vector<1xf32> to vector<1x1x1xf32>
    %60 = vector.extract %59[0, 0, 0] : f32 from vector<1x1x1xf32>
    %61 = vector.broadcast %60 : f32 to vector<1x1xf32>
    %cst_13 = arith.constant 1.280000e+02 : f32
    %62 = vector.broadcast %cst_13 : f32 to vector<1x1xf32>
    %63 = arith.divf %61, %62 : vector<1x1xf32>
    %64 = vector.broadcast %63 : vector<1x1xf32> to vector<8x16xf32>
    %65 = arith.subf %56, %64 : vector<8x16xf32>
    %66 = arith.mulf %65, %65 : vector<8x16xf32>
    %67 = vector.shape_cast %66 : vector<8x16xf32> to vector<1x8x16xf32>
    %cst_14 = arith.constant dense<0.000000e+00> : vector<1xf32>
    %68 = vector.multi_reduction <add>, %67, %cst_14 [1, 2] : vector<1x8x16xf32> to vector<1xf32>
    %69 = vector.shape_cast %68 : vector<1xf32> to vector<1x1x1xf32>
    %70 = vector.extract %69[0, 0, 0] : f32 from vector<1x1x1xf32>
    %71 = vector.broadcast %70 : f32 to vector<1x1xf32>
    %cst_15 = arith.constant 1.280000e+02 : f32
    %72 = vector.broadcast %cst_15 : f32 to vector<1x1xf32>
    %73 = arith.divf %71, %72 : vector<1x1xf32>
    %74 = vector.broadcast %63 : vector<1x1xf32> to vector<8x16xf32>
    %75 = arith.subf %56, %74 : vector<8x16xf32>
    %cst_16 = arith.constant 9.99999974E-6 : f32
    %76 = vector.broadcast %cst_16 : f32 to vector<1x1xf32>
    %77 = arith.addf %73, %76 : vector<1x1xf32>
    %78 = math.rsqrt %77 : vector<1x1xf32>
    %79 = vector.broadcast %78 : vector<1x1xf32> to vector<8x16xf32>
    %80 = arith.mulf %75, %79 : vector<8x16xf32>
    %81 = arith.mulf %26, %53 : vector<8x16xf32>
    %82 = arith.mulf %51, %52 : vector<8x16xf32>
    %83 = arith.addf %81, %82 : vector<8x16xf32>
    %84 = vector.shape_cast %83 : vector<8x16xf32> to vector<1x8x16xf32>
    %cst_17 = arith.constant dense<0.000000e+00> : vector<1xf32>
    %85 = vector.multi_reduction <add>, %84, %cst_17 [1, 2] : vector<1x8x16xf32> to vector<1xf32>
    %86 = vector.shape_cast %85 : vector<1xf32> to vector<1x1x1xf32>
    %87 = vector.extract %86[0, 0, 0] : f32 from vector<1x1x1xf32>
    %88 = vector.broadcast %87 : f32 to vector<1x1xf32>
    %cst_18 = arith.constant 1.280000e+02 : f32
    %89 = vector.broadcast %cst_18 : f32 to vector<1x1xf32>
    %90 = arith.divf %88, %89 : vector<1x1xf32>
    %91 = vector.broadcast %90 : vector<1x1xf32> to vector<8x16xf32>
    %92 = arith.subf %83, %91 : vector<8x16xf32>
    %93 = arith.mulf %92, %92 : vector<8x16xf32>
    %94 = vector.shape_cast %93 : vector<8x16xf32> to vector<1x8x16xf32>
    %cst_19 = arith.constant dense<0.000000e+00> : vector<1xf32>
    %95 = vector.multi_reduction <add>, %94, %cst_19 [1, 2] : vector<1x8x16xf32> to vector<1xf32>
    %96 = vector.shape_cast %95 : vector<1xf32> to vector<1x1x1xf32>
    %97 = vector.extract %96[0, 0, 0] : f32 from vector<1x1x1xf32>
    %98 = vector.broadcast %97 : f32 to vector<1x1xf32>
    %cst_20 = arith.constant 1.280000e+02 : f32
    %99 = vector.broadcast %cst_20 : f32 to vector<1x1xf32>
    %100 = arith.divf %98, %99 : vector<1x1xf32>
    %101 = vector.broadcast %90 : vector<1x1xf32> to vector<8x16xf32>
    %102 = arith.subf %83, %101 : vector<8x16xf32>
    %cst_21 = arith.constant 9.99999974E-6 : f32
    %103 = vector.broadcast %cst_21 : f32 to vector<1x1xf32>
    %104 = arith.addf %100, %103 : vector<1x1xf32>
    %105 = math.rsqrt %104 : vector<1x1xf32>
    %106 = vector.broadcast %105 : vector<1x1xf32> to vector<8x16xf32>
    %107 = arith.mulf %102, %106 : vector<8x16xf32>
    %108 = tpu.concatenate %80, %107 in 1 : vector<8x16xf32>, vector<8x16xf32> -> vector<8x32xf32>
    %c0_22 = arith.constant 0 : index
    %c0_23 = arith.constant 0 : index
    %109 = vector.load %arg2[%c0_22, %c0_23] : memref<32x256xf32, #tpu.memory_space<vmem>>, vector<32x256xf32>
    %cst_24 = arith.constant dense<0.000000e+00> : vector<8x256xf32>
    %110 = tpu.matmul %108, %109, %cst_24 {dimension_numbers = #tpu.dot_dimension_numbers<[1], [0], [0], [1], [0, 0, 1, 1], [], []>} : vector<8x32xf32>, vector<32x256xf32>, vector<8x256xf32> -> vector<8x256xf32>
    %111 = arith.negf %110 : vector<8x256xf32>
    %112 = math.exp %111 : vector<8x256xf32>
    %cst_25 = arith.constant 1.000000e+00 : f32
    %113 = vector.broadcast %cst_25 : f32 to vector<8x256xf32>
    %114 = arith.addf %113, %112 : vector<8x256xf32>
    %115 = arith.divf %113, %114 : vector<8x256xf32>
    %c0_26 = arith.constant 0 : index
    %c0_27 = arith.constant 0 : index
    %116 = vector.load %arg4[%c0_26, %c0_27] : memref<8x256xf32, #tpu.memory_space<vmem>>, vector<8x256xf32>
    tpu.vector_store %arg4[%c0_26, %c0_27], %115 {strides = array<i32>} : memref<8x256xf32, #tpu.memory_space<vmem>>, vector<8x256xf32>,
    %cst_28 = arith.constant 0.000000e+00 : f32
    %117 = vector.broadcast %cst_28 : f32 to vector<8x256xf32>
    %118 = arith.maximumf %110, %117 : vector<8x256xf32>
    %119 = math.absf %110 : vector<8x256xf32>
    %cst_29 = arith.constant 0.000000e+00 : f32
    %120 = vector.broadcast %cst_29 : f32 to vector<8x256xf32>
    %121 = arith.subf %120, %119 : vector<8x256xf32>
    %122 = math.exp %121 : vector<8x256xf32>
    %cst_30 = arith.constant 1.000000e+00 : f32
    %123 = vector.broadcast %cst_30 : f32 to vector<8x256xf32>
    %124 = arith.addf %123, %122 : vector<8x256xf32>
    %125 = math.log %124 : vector<8x256xf32>
    %126 = arith.addf %118, %125 : vector<8x256xf32>
    %127 = arith.subf %110, %126 : vector<8x256xf32>
    %cst_31 = arith.constant -1.000000e+02 : f32
    %128 = vector.broadcast %cst_31 : f32 to vector<8x256xf32>
    %129 = arith.maximumf %127, %128 : vector<8x256xf32>
    %cst_32 = arith.constant 0.000000e+00 : f32
    %130 = vector.broadcast %cst_32 : f32 to vector<8x256xf32>
    %131 = arith.subf %130, %126 : vector<8x256xf32>
    %cst_33 = arith.constant -1.000000e+02 : f32
    %132 = vector.broadcast %cst_33 : f32 to vector<8x256xf32>
    %133 = arith.maximumf %131, %132 : vector<8x256xf32>
    %c0_34 = arith.constant 0 : index
    %c0_35 = arith.constant 0 : index
    %134 = vector.load %arg3[%c0_34, %c0_35] : memref<8x256xf32, #tpu.memory_space<vmem>>, vector<8x256xf32>
    %135 = arith.mulf %134, %129 : vector<8x256xf32>
    %cst_36 = arith.constant 1.000000e+00 : f32
    %136 = vector.broadcast %cst_36 : f32 to vector<8x256xf32>
    %137 = arith.subf %136, %134 : vector<8x256xf32>
    %138 = arith.mulf %137, %133 : vector<8x256xf32>
    %139 = arith.addf %135, %138 : vector<8x256xf32>
    %cst_37 = arith.constant 0.000000e+00 : f32
    %140 = vector.broadcast %cst_37 : f32 to vector<8x256xf32>
    %141 = arith.subf %140, %139 : vector<8x256xf32>
    %142 = vector.shape_cast %141 : vector<8x256xf32> to vector<1x8x256xf32>
    %cst_38 = arith.constant dense<0.000000e+00> : vector<1xf32>
    %143 = vector.multi_reduction <add>, %142, %cst_38 [1, 2] : vector<1x8x256xf32> to vector<1xf32>
    %144 = vector.shape_cast %143 : vector<1xf32> to vector<1x1x1xf32>
    %145 = vector.extract %144[0, 0, 0] : f32 from vector<1x1x1xf32>
    %cst_39 = arith.constant 4.8828125E-4 : f32
    %146 = arith.mulf %145, %cst_39 : f32
    %c0_40 = arith.constant 0 : index
    %147 = memref.load %arg5[%c0_40] : memref<1xf32, #tpu.memory_space<smem>>
    memref.store %146, %arg5[%c0_40] : memref<1xf32, #tpu.memory_space<smem>>
    return
  }
}

</mosaic_0001>

<bundles_post_ra>
// kernel: complex_kge_forward.1
= control target key start
LH: loop header
LB: loop body
LE: loop exit
PB: predicated region body
PF: predicated region fallthrough
CT: control target
= control target key end

     0   :  { %11 = vsyncpa [#allocation3], 0  ;;  %vm23_vm0 = vcmask 130048   ;;  %s533_s0 = inlined_call_operand.vmem [shape: f32[8,32], index: 0, kind: input, shape index: {}]   ;;  %s534_s1 = inlined_call_operand.vmem [shape: f32[8,32], index: 1, kind: input, shape index: {}]   ;;  %s535_s2 = inlined_call_operand.vmem [shape: f32[32,256], index: 2, kind: input, shape index: {}]   ;;  %s536_s3 = inlined_call_operand.vmem [shape: f32[8,256], index: 3, kind: input, shape index: {}]   ;;  %s537_s4 = inlined_call_operand.hbm [shape: f32[8,256], index: 4, kind: output, shape index: {0}]   ;;  %s538_s5 = inlined_call_operand.hbm [shape: f32[1], index: 5, kind: output, shape index: {1}]  }
   0x1   :  { %v21_v0 = vld [vmem:[%s533_s0] sm:$0xff] }
   0x2   :  { %12 = vsyncpa [#allocation4], 0  ;;  %v24_v1 = vsel %vm23_vm0, %v21_v0, 0.0  ;;  %s432_s20 = smov 112   ;;  %v22_v36 = vld [vmem:[%s534_s1] sm:$0xff]  ;;  %s433_s1 = smov 16  }
   0x3   :  { %25 = vadd.xlane.f32.xlu0 %v24_v1  ;;  %vm183_vm1 = vcmask 261120  }
  0x19   :  { %55 = vrot.lane.b32.xlu0 %v21_v0, %s432_s20 }
  0x8c   :  { %v26_v2 = vpop.xlane.xlu0 %25 }
  0x8d   :  { %v27_v3 = vrot.slane %v26_v2, 4 }
  0x8f   :  { %v28_v4 = vadd.f32 %v27_v3, %v26_v2 }
  0x90   :  { %v56_v13 = vpop.permute.xlu0 %55 }
  0x91   :  { %v29_v5 = vrot.slane %v28_v4, 2  ;;  %v58_v15 = vsel %vm23_vm0, %v56_v13, 0.0 }
  0x93   :  { %v30_v6 = vadd.f32 %v29_v5, %v28_v4 }
  0x95   :  { %v31_v7 = vrot.slane %v30_v6, 1 }
  0x97   :  { %v32_v8 = vadd.f32 %v31_v7, %v30_v6 }
  0x99   :  { %353 = vpush %v32_v8 }
  0xca   :  { %s354_s21 = spop %353 }
  0xcb   :  { %v34_v9 = vstv %s354_s21 }
  0xcc   :  { %v36_v10 = vmul.f32 0.0078125, %v34_v9 }
  0xce   :  { %v37_v11 = vsub.f32 %v21_v0, %v36_v10 }
  0xd0   :  { %v38_v12 = vmul.f32 %v37_v11, %v37_v11 }
  0xd2   :  { %v39_v14 = vsel %vm23_vm0, %v38_v12, 0.0 }
  0xd3   :  { %40 = vadd.xlane.f32.xlu1 %v39_v14 }
  0xd7   :  { %59 = vadd.xlane.f32.xlu1 %v58_v15 }
 0x15c   :  { %v41_v16 = vpop.xlane.xlu1 %40 }
 0x15d   :  { %v42_v17 = vrot.slane %v41_v16, 4 }
 0x15f   :  { %v43_v18 = vadd.f32 %v42_v17, %v41_v16 }
 0x160   :  { %v60_v19 = vpop.xlane.xlu1 %59 }
 0x161   :  { %v44_v20 = vrot.slane %v43_v18, 2  ;;  %v61_v21 = vrot.slane %v60_v19, 4 }
 0x163   :  { %v62_v22 = vadd.f32 %v61_v21, %v60_v19  ;;  %v45_v23 = vadd.f32 %v44_v20, %v43_v18 }
 0x165   :  { %v63_v24 = vrot.slane %v62_v22, 2  ;;  %v46_v25 = vrot.slane %v45_v23, 1 }
 0x167   :  { %v47_v26 = vadd.f32 %v46_v25, %v45_v23  ;;  %v64_v27 = vadd.f32 %v63_v24, %v62_v22 }
 0x169   :  { %355 = vpush %v47_v26  ;;  %v65_v28 = vrot.slane %v64_v27, 1 }
 0x16b   :  { %v66_v29 = vadd.f32 %v65_v28, %v64_v27 }
 0x16d   :  { %357 = vpush %v66_v29 }
 0x19a   :  { %s356_s0 = spop %355 }
 0x19b   :  { %v49_v50 = vstv %s356_s0 }
 0x19c   :  { %v50_v51 = vmul.f32 0.0078125, %v49_v50  ;;  %v175_v50 = vld [vmem:[%s535_s2] sm:$0xff] }
 0x19e   :  { %s358_s22 = spop %357  ;;  %v51_v52 = vadd.f32 1e-05, %v50_v51  ;;  %v434_v51 = vmov 0.0  }
 0x19f   :  { %v68_v30 = vstv %s358_s22  ;;  %251 = vmatprep.mubr.f32.mxu0 %v434_v51 }
 0x1a0   :  { %v69_v31 = vmul.f32 0.0078125, %v68_v30 }
 0x1a2   :  { %v70_v32 = vsub.f32 %v21_v0, %v69_v31 }
 0x1a4   :  { %v71_v33 = vmul.f32 %v70_v32, %v70_v32 }
 0x1a6   :  { %73 = vrot.lane.b32.xlu1 %v71_v33, %s432_s20  ;;  %v182_v33 = vld [vmem:[%s535_s2 + $0x38] sm:$0xff] }
 0x1a7   :  { %211 = vmatprep.subr.mxu0 %v182_v33 }
 0x218   :  { %v74_v34 = vpop.permute.xlu1 %73 }
 0x219   :  { %v76_v35 = vsel %vm23_vm0, %v74_v34, 0.0  ;;  %v181_v34 = vld [vmem:[%s535_s2 + $0x30] sm:$0xff] }
 0x21a   :  { %77 = vadd.xlane.f32.xlu1 %v76_v35  ;;  %v180_v35 = vld [vmem:[%s535_s2 + $0x28] sm:$0xff]  ;;  %212 = vmatpush1.msra.mxu0 %v181_v34 }
 0x21b   :  { %213 = vmatprep.subr.mxu0 %v180_v35 }
 0x22b   :  { %128 = vrot.lane.b32.xlu1 %v22_v36, %s432_s20 }
 0x2a3   :  { %v78_v37 = vpop.xlane.xlu1 %77 }
 0x2a4   :  { %v79_v38 = vrot.slane %v78_v37, 4 }
 0x2a6   :  { %v80_v39 = vadd.f32 %v79_v38, %v78_v37  ;;  %v178_v37 = vld [vmem:[%s535_s2 + $0x18] sm:$0xff]  ;;  %v177_v38 = vld [vmem:[%s535_s2 + $0x10] sm:$0xff] }
 0x2a7   :  { %v129_v9 = vpop.permute.xlu1 %128 }
 0x2a8   :  { %v81_v40 = vrot.slane %v80_v39, 2 }
 0x2aa   :  { %v82_v41 = vadd.f32 %v81_v40, %v80_v39  ;;  %v176_v39 = vld [vmem:[%s535_s2 + $0x8] sm:$0xff] }
 0x2ac   :  { %v83_v42 = vrot.slane %v82_v41, 1 }
 0x2ae   :  { %v84_v43 = vadd.f32 %v83_v42, %v82_v41 }
 0x2b0   :  { %359 = vpush %v84_v43 }
 0x2e1   :  { %s360_s25 = spop %359 }
 0x2e2   :  { %v86_v44 = vstv %s360_s25 }
 0x2e3   :  { %v87_v45 = vmul.f32 0.0078125, %v86_v44 }
 0x2e5   :  { %v88_v46 = vadd.f32 1e-05, %v87_v45 }
 0x2e7   :  { %376 = vrsqrt.f32 %v88_v46 }
 0x2e8   :  { %378 = vrsqrt.f32 %v51_v52 }
 0x2f4   :  { %v377_v47 = vpop.eup %376 }
 0x2f5   :  { %v90_v48 = vmul.f32 %v377_v47, %v70_v32  ;;  %v379_v53 = vpop.eup %378 }
 0x2f6   :  { %v53_v54 = vmul.f32 %v379_v53, %v37_v11 }
 0x2f7   :  { %v92_v49 = vmul.f32 %v90_v48, %v22_v36 }
 0x2f8   :  { %v91_v55 = vmul.f32 %v53_v54, %v22_v36  ;;  %v131_v10 = vmul.f32 %v129_v9, %v53_v54 }
 0x2f9   :  { %94 = vrot.lane.b32.xlu0 %v92_v49, %s432_s20 }
 0x36b   :  { %v95_v56 = vpop.permute.xlu0 %94 }
 0x36c   :  { %v97_v57 = vsub.f32 %v91_v55, %v95_v56 }
 0x36e   :  { %v98_v58 = vsel %vm23_vm0, %v97_v57, 0.0 }
 0x36f   :  { %99 = vadd.xlane.f32.xlu0 %v98_v58 }
 0x385   :  { %132 = vrot.lane.b32.xlu0 %v22_v36, %s433_s1  ;;  %v179_v36 = vld [vmem:[%s535_s2 + $0x20] sm:$0xff] }
 0x386   :  { %214 = vmatpush1.msra.mxu0 %v179_v36 }
 0x387   :  { %215 = vmatprep.subr.mxu0 %v178_v37 }
 0x388   :  { %216 = vmatpush1.msra.mxu0 %v177_v38 }
 0x389   :  { %217 = vmatprep.subr.mxu0 %v176_v39 }
 0x38a   :  { %218 = vmatpush1.msra.mxu0 %v175_v50 }
 0x3f8   :  { %v100_v59 = vpop.xlane.xlu0 %99 }
 0x3f9   :  { %v101_v60 = vrot.slane %v100_v59, 4 }
 0x3fb   :  { %v102_v61 = vadd.f32 %v101_v60, %v100_v59 }
 0x3fc   :  { %v133_v62 = vpop.permute.xlu0 %132 }
 0x3fd   :  { %v103_v63 = vrot.slane %v102_v61, 2  ;;  %v135_v0 = vmul.f32 %v133_v62, %v90_v48 }
 0x3ff   :  { %137 = vrot.lane.b32.xlu1 %v135_v0, %s432_s20  ;;  %v104_v1 = vadd.f32 %v103_v63, %v102_v61 }
 0x401   :  { %v105_v2 = vrot.slane %v104_v1, 1 }
 0x403   :  { %v106_v3 = vadd.f32 %v105_v2, %v104_v1 }
 0x405   :  { %361 = vpush %v106_v3 }
 0x436   :  { %s362_s26 = spop %361 }
 0x437   :  { %v108_v4 = vstv %s362_s26 }
 0x438   :  { %v109_v5 = vmul.f32 0.0078125, %v108_v4 }
 0x43a   :  { %v484_v6 = vsub.f32 %v97_v57, %v109_v5 }
 0x43c   :  { %v111_v7 = vmul.f32 %v484_v6, %v484_v6 }
 0x43e   :  { %v112_v8 = vsel %vm23_vm0, %v111_v7, 0.0 }
 0x43f   :  { %113 = vadd.xlane.f32.xlu1 %v112_v8 }
 0x471   :  { %v138_v11 = vpop.permute.xlu1 %137 }
 0x472   :  { %v140_v12 = vadd.f32 %v138_v11, %v131_v10 }
 0x474   :  { %v141_v13 = vsel %vm23_vm0, %v140_v12, 0.0 }
 0x475   :  { %142 = vadd.xlane.f32.xlu0 %v141_v13 }
 0x4c8   :  { %v114_v14 = vpop.xlane.xlu1 %113 }
 0x4c9   :  { %v115_v15 = vrot.slane %v114_v14, 4 }
 0x4cb   :  { %v116_v16 = vadd.f32 %v115_v15, %v114_v14 }
 0x4cd   :  { %v117_v17 = vrot.slane %v116_v16, 2 }
 0x4cf   :  { %v118_v18 = vadd.f32 %v117_v17, %v116_v16 }
 0x4d1   :  { %v119_v19 = vrot.slane %v118_v18, 1 }
 0x4d3   :  { %v120_v20 = vadd.f32 %v119_v19, %v118_v18 }
 0x4d5   :  { %363 = vpush %v120_v20  ;;  %v298_v20 = vld [vmem:[%s536_s3] sm:$0xff] }
 0x4fe   :  { %v143_v21 = vpop.xlane.xlu0 %142 }
 0x4ff   :  { %v144_v22 = vrot.slane %v143_v21, 4 }
 0x501   :  { %v145_v23 = vadd.f32 %v144_v22, %v143_v21 }
 0x503   :  { %v146_v24 = vrot.slane %v145_v23, 2 }
 0x505   :  { %v147_v25 = vadd.f32 %v146_v24, %v145_v23 }
 0x506   :  { %s490_s27 = spop %363 }
 0x507   :  { %v148_v26 = vrot.slane %v147_v25, 1  ;;  %v122_v54 = vstv %s490_s27 }
 0x508   :  { %v123_v55 = vmul.f32 0.0078125, %v122_v54 }
 0x509   :  { %v149_v27 = vadd.f32 %v148_v26, %v147_v25 }
 0x50a   :  { %v124_v56 = vadd.f32 1e-05, %v123_v55 }
 0x50b   :  { %365 = vpush %v149_v27  ;;  %v299_v27 = vld [vmem:[%s536_s3 + $0x8] sm:$0xff]  ;;  %s435_s3 = smov [#allocation2]  }
 0x50c   :  { %v303_v34 = vsub.f32 1.0, %v299_v27  ;;  %s329_s23 = sshll.u32 %s435_s3, 4  ;;  %s330_s23 = int_to_ptr.vmem [resolvable:$true] %s329_s23 }
 0x50d   :  { %s400_s24 = scalar_lea.vmem %s330_s23, 256  ;;  %p405_p1 = scmp.lt.s32.totalorder %s330_s23, %s330_s23 }
 0x50e   :  { %p401_p0 = scmp.ne.s32.totalorder %s330_s23, %s400_s24  ;;  %p406_p2 = scmp.lt.s32.totalorder %s400_s24, %s400_s24 }
 0x510   :  { %p407_p3 = por %p406_p2, %p405_p1 }
 0x512   :  { %p408_p4 = pnand %p407_p3, %p401_p0 }
 0x53c   :  { %s366_s28 = spop %365 }
 0x53d   :  { %v151_v28 = vstv %s366_s28 }
 0x53e   :  { %v152_v29 = vmul.f32 0.0078125, %v151_v28  ;;  %v302_v28 = vsub.f32 1.0, %v298_v20 }
 0x540   :  { %v153_v30 = vsub.f32 %v140_v12, %v152_v29 }
 0x542   :  { %v154_v31 = vmul.f32 %v153_v30, %v153_v30 }
 0x544   :  { %v155_v32 = vsel %vm23_vm0, %v154_v31, 0.0 }
 0x545   :  { %156 = vadd.xlane.f32.xlu0 %v155_v32 }
 0x5ce   :  { %v157_v40 = vpop.xlane.xlu0 %156 }
 0x5cf   :  { %v158_v41 = vrot.slane %v157_v40, 4 }
 0x5d1   :  { %v159_v42 = vadd.f32 %v158_v41, %v157_v40 }
 0x5d3   :  { %v160_v43 = vrot.slane %v159_v42, 2 }
 0x5d5   :  { %v161_v44 = vadd.f32 %v160_v43, %v159_v42 }
 0x5d7   :  { %v162_v45 = vrot.slane %v161_v44, 1 }
 0x5d9   :  { %v163_v46 = vadd.f32 %v162_v45, %v161_v44 }
 0x5db   :  { %367 = vpush %v163_v46 }
 0x60c   :  { %s368_s18 = spop %367 }
 0x60d   :  { %v165_v47 = vstv %s368_s18 }
 0x60e   :  { %v166_v48 = vmul.f32 0.0078125, %v165_v47 }
 0x610   :  { %v167_v49 = vadd.f32 1e-05, %v166_v48 }
 0x612   :  { %380 = vrsqrt.f32 %v167_v49 }
 0x613   :  { %382 = vrsqrt.f32 %v124_v56 }
 0x61f   :  { %v381_v52 = vpop.eup %380 }
 0x620   :  { %v169_v53 = vmul.f32 %v381_v52, %v153_v30  ;;  %v383_v57 = vpop.eup %382 }
 0x621   :  { %v126_v58 = vmul.f32 %v383_v57, %v484_v6 }
 0x622   :  { %171 = vrot.lane.b32.xlu0 %v169_v53, %s433_s1 }
 0x694   :  { %v172_v59 = vpop.permute.xlu0 %171 }
 0x695   :  { %v174_v60 = vsel %vm23_vm0, %v126_v58, %v172_v59 }
 0x696   :  { %350 = vmatmul.mubr.msk.f32.vlgmr.msra.gmra.mxu0 %vm183_vm1, %v174_v60 }
 0x756   :  { %v253_v61 = vpop.f32.mrf.mxu0 }
 0x757   :  { %v351_v62 = vmul.f32 -1.442695, %v253_v61  ;;  %v274_v63 = vand.u32 2147483647, %v253_v61  ;;  %v272_v18 = vmax.f32 %v253_v61, 0.0 }
 0x758   :  { %v255_v0 = vpop.f32.mrf.mxu0 }
 0x759   :  { %384 = vpow2.f32 %v351_v62  ;;  %v276_v1 = vsub.f32 0.0, %v274_v63  ;;  %v352_v2 = vmul.f32 -1.442695, %v255_v0  ;;  %v275_v3 = vand.u32 2147483647, %v255_v0 }
 0x75a   :  { %v273_v23 = vmax.f32 %v255_v0, 0.0 }
 0x75b   :  { %v278_v4 = vmul.f32 1.442695, %v276_v1  ;;  %386 = vpow2.f32 %v352_v2  ;;  %v277_v5 = vsub.f32 0.0, %v275_v3 }
 0x75d   :  { %388 = vpow2.f32 %v278_v4  ;;  %v280_v7 = vmul.f32 1.442695, %v277_v5 }
 0x75f   :  { %390 = vpow2.f32 %v280_v7 }
 0x766   :  { %v385_v6 = vpop.eup %384 }
 0x767   :  { %v264_v8 = vadd.f32 1.0, %v385_v6 }
 0x768   :  { %v387_v9 = vpop.eup %386 }
 0x769   :  { %v265_v10 = vadd.f32 1.0, %v387_v9  ;;  %392 = vrcp.f32 %v264_v8 }
 0x76a   :  { %v389_v11 = vpop.eup %388 }
 0x76b   :  { %v282_v12 = vadd.f32 1.0, %v389_v11  ;;  %394 = vrcp.f32 %v265_v10 }
 0x76c   :  { %v391_v13 = vpop.eup %390 }
 0x76d   :  { %396 = vlog2.f32 %v282_v12  ;;  %v283_v14 = vadd.f32 1.0, %v391_v13 }
 0x76f   :  { %398 = vlog2.f32 %v283_v14 }
 0x776   :  { %v393_v15 = vpop.eup %392 }
 0x777   :  { %270 = vst [vmem:[#allocation2] sm:$0xff] %v393_v15 }
 0x778   :  { %v395_v16 = vpop.eup %394 }
 0x779   :  { %271 = vst [vmem:[#allocation2 + $0x8] sm:$0xff] %v395_v16 }
 0x77a   :  { %v397_v17 = vpop.eup %396 }
 0x77b   :  { %v285_v19 = vmul.f32 0.6931472, %v397_v17 }
 0x77c   :  { %v399_v21 = vpop.eup %398 }
 0x77d   :  { %v288_v22 = vadd.f32 %v285_v19, %v272_v18  ;;  %v287_v24 = vmul.f32 0.6931472, %v399_v21 }
 0x77f   :  { %v290_v25 = vsub.f32 %v253_v61, %v288_v22  ;;  %v294_v26 = vsub.f32 0.0, %v288_v22  ;;  %v289_v29 = vadd.f32 %v287_v24, %v273_v23 }
 0x781   :  { %v292_v30 = vmax.f32 %v290_v25, -100.0  ;;  %v296_v31 = vmax.f32 %v294_v26, -100.0  ;;  %v291_v32 = vsub.f32 %v255_v0, %v289_v29  ;;  %v295_v33 = vsub.f32 0.0, %v289_v29 }
 0x783   :  { %v300_v35 = vmul.f32 %v298_v20, %v292_v30  ;;  %v304_v36 = vmul.f32 %v302_v28, %v296_v31  ;;  %v293_v37 = vmax.f32 %v291_v32, -100.0  ;;  %v297_v38 = vmax.f32 %v295_v33, -100.0 }
 0x785   :  { %v301_v39 = vmul.f32 %v299_v27, %v293_v37  ;;  %v305_v40 = vmul.f32 %v303_v34, %v297_v38  ;;  %v306_v41 = vadd.f32 %v304_v36, %v300_v35 }
 0x787   :  { %v307_v42 = vadd.f32 %v305_v40, %v301_v39  ;;  %v308_v43 = vsub.f32 0.0, %v306_v41 }
 0x789   :  { %v309_v44 = vsub.f32 0.0, %v307_v42 }
 0x78b   :  { %v310_v45 = vadd.f32 %v309_v44, %v308_v43 }
 0x78d   :  { %311 = vadd.xlane.f32.xlu1 %v310_v45 }
 0x78e   :  { %411 = shalt.err (!%p408_p4)
}
 0x78f   :  { %332 = dma.vmem_to_hbm [thread:$0]  %s330_s23, 256, %s537_s4, [#allocation3]  }
 0x790   :  { %s436_s28 = smov [#allocation5]  }
 0x816   :  { %v312_v46 = vpop.xlane.xlu1 %311 }
 0x817   :  { %v313_v47 = vrot.slane %v312_v46, 4 }
 0x819   :  { %v314_v48 = vadd.f32 %v313_v47, %v312_v46 }
 0x81b   :  { %v315_v49 = vrot.slane %v314_v48, 2 }
 0x81d   :  { %v316_v50 = vadd.f32 %v315_v49, %v314_v48 }
 0x81f   :  { %v317_v51 = vrot.slane %v316_v50, 1 }
 0x821   :  { %v318_v52 = vadd.f32 %v317_v51, %v316_v50 }
 0x823   :  { %369 = vpush %v318_v52 }
 0x854   :  { %s370_s26 = spop %369 }
 0x855   :  { %s320_s27 = smul.f32 0.00048828125, %s370_s26 }
 0x857   :  { %322 = sst [smem:[#allocation5]] %s320_s27 }
 0x858   :  { %340 = dma.smem_to_hbm %s436_s28, 16, %s538_s5, [#allocation4]  }
 0x859   :  { %428 = dma.done.wait [#allocation3], 256  }
 0x85a   :  { %429 = vsyncadd [#allocation3], 4294967040 }
 0x85b   :  { %430 = dma.done.wait [#allocation4], 16  }
 0x85c   :  { %431 = vsyncadd [#allocation4], 4294967280 }
 0x85d   :  { %347 = sfence }
 0x85e   :  { %348 = vsyncpa [#allocation3], 1 }
 0x85f   :  { %349 = vsyncpa [#allocation4], 1 }

</bundles_post_ra>
